<compile_context>
chip_gen: v7x
topology: tpu7x:2x2x1
jax: 0.10.0
libtpu: 0.0.40
codegen_flags: <defaults>
</compile_context>

<pallas_src>
import functools

import jax
import jax.numpy as jnp
import numpy as np
from jax.experimental import pallas as pl
from jax.experimental.pallas import tpu as pltpu


def _convbank_kernel(kernels, t_tile, halo, cnn_size, t_valid,
                     x_ref, w_in_ref, b_in_ref, w_stack_ref, b_conv_ref,
                     w_out_ref, b_out_ref, o_ref):
    """One (batch, time-tile) grid step.

    x_ref      : (t_tile + 2*halo, D_in)  bf16  halo'd window of the features
    w_in_ref   : (D_in, H)                bf16
    b_in_ref   : (1, H)                   f32
    w_stack_ref: (H, sum(k_i)*C)          bf16  all conv taps stacked on N
    b_conv_ref : (1, n_k*C)               f32   concatenated conv biases
    w_out_ref  : (n_k*C, NCLS_PAD)        bf16  class dim zero-padded to 128
    b_out_ref  : (1, NCLS_PAD)            f32
    o_ref      : (t_tile, NCLS_PAD)       f32
    """
    f32 = jnp.float32
    bf16 = jnp.bfloat16
    win = t_tile + 2 * halo
    C = cnn_size

    # ---- in_linear + ReLU on the halo-extended window (bf16 MXU, f32 acc) ----
    h = jnp.dot(x_ref[...], w_in_ref[...], preferred_element_type=f32)
    h = jnp.maximum(h + b_in_ref[...], 0.0)                        # (win, H)

    # Conv1d zero-padding semantics: h rows outside the real sequence must be
    # exactly 0 (padded x rows are 0, but relu(b_in) != 0), so mask them.
    t0 = pl.program_id(1) * t_tile
    g = t0 + jax.lax.broadcasted_iota(jnp.int32, (win, 1), 0) - halo
    h = jnp.where((g >= 0) & (g < t_valid), h, 0.0)

    # ---- all conv taps of all banks in ONE wide matmul ------------------------
    # P[:, bank_off + dt*C : bank_off + (dt+1)*C] == h @ w_conv_bank[dt]
    p = jnp.dot(h.astype(bf16), w_stack_ref[...],
                preferred_element_type=f32)                        # (win, sum(k)*C)

    # ---- per-tap time-shift + accumulate (static slices, VPU adds) ------------
    feats = []
    col = 0
    for k in kernels:
        pad = k // 2
        acc = jnp.zeros((t_tile, C), f32)
        for dt in range(k):                     # static, unrolled
            r0 = halo + dt - pad                # 0 <= r0 <= 2*halo
            acc = acc + p[r0:r0 + t_tile, col + dt * C: col + (dt + 1) * C]
        feats.append(acc)
        col += k * C

    hidden = jnp.concatenate(feats, axis=1)                        # (t_tile, n_k*C)
    hidden = jnp.maximum(hidden + b_conv_ref[...], 0.0)            # bias hoisted + ReLU

    # ---- out_linear (lane-dense 128-wide output) -------------------------------
    out = jnp.dot(hidden.astype(bf16), w_out_ref[...],
                  preferred_element_type=f32) + b_out_ref[...]
    o_ref[...] = out.astype(o_ref.dtype)


def convbank_forward(features, params, kernels, *, t_tile=128):
    """features: (B, T, input_dim) float32 -> logits (B, T, n_class) float32."""
    assert len(kernels) > 0
    # Only odd kernels give PyTorch Conv1d "same length" output with padding=k//2.
    assert all(k % 2 == 1 for k in kernels), "even kernel sizes not supported"
    assert t_tile % 8 == 0

    B, T, D_in = features.shape
    H = params["w_in"].shape[1]
    C = params["b_conv0"].shape[1]
    n_k = len(kernels)
    n_class = params["w_out"].shape[1]
    bf16, f32 = jnp.bfloat16, jnp.float32

    halo = max(kernels) // 2
    t_tile = min(t_tile, ((T + 7) // 8) * 8)          # don't over-tile short sequences
    T_pad = ((T + t_tile - 1) // t_tile) * t_tile
    nt = T_pad // t_tile
    win = t_tile + 2 * halo

    # Overlapping halo'd windows of x, built once by XLA outside the kernel:
    # window t covers padded rows [t*t_tile - halo, t*t_tile + t_tile + halo).
    xp = jnp.pad(features, ((0, 0), (halo, halo + (T_pad - T)), (0, 0)))
    x_tiles = jnp.stack(
        [xp[:, t * t_tile: t * t_tile + win, :] for t in range(nt)], axis=1
    ).astype(bf16)                                                 # (B, nt, win, D_in)

    # Stack every conv tap of every bank along the output (lane) dim.
    w_stack = jnp.concatenate(
        [jnp.transpose(params[f"w_conv{i}"], (1, 0, 2)).reshape(H, k * C)
         for i, k in enumerate(kernels)], axis=1).astype(bf16)     # (H, sum(k)*C)
    b_conv = jnp.concatenate(
        [params[f"b_conv{i}"] for i in range(n_k)], axis=1).astype(f32)  # (1, n_k*C)

    # Lane-dense output: pad the class dim to a multiple of 128.
    ncls_pad = max(128, ((n_class + 127) // 128) * 128)
    w_out = jnp.zeros((n_k * C, ncls_pad), bf16).at[:, :n_class].set(
        params["w_out"].astype(bf16))
    b_out = jnp.zeros((1, ncls_pad), f32).at[:, :n_class].set(
        params["b_out"].astype(f32))

    w_in = params["w_in"].astype(bf16)
    b_in = params["b_in"].astype(f32)

    kernel_fn = functools.partial(
        _convbank_kernel, tuple(kernels), t_tile, halo, C, T)

    out_padded = pl.pallas_call(
        kernel_fn,
        out_shape=jax.ShapeDtypeStruct((B, T_pad, ncls_pad), f32),
        grid_spec=pltpu.PrefetchScalarGridSpec(
            num_scalar_prefetch=0,
            grid=(B, nt),
            in_specs=[
                pl.BlockSpec((None, None, win, D_in), lambda b, t: (b, t, 0, 0)),
                pl.BlockSpec(w_in.shape, lambda b, t: (0, 0)),
                pl.BlockSpec(b_in.shape, lambda b, t: (0, 0)),
                pl.BlockSpec(w_stack.shape, lambda b, t: (0, 0)),
                pl.BlockSpec(b_conv.shape, lambda b, t: (0, 0)),
                pl.BlockSpec(w_out.shape, lambda b, t: (0, 0)),
                pl.BlockSpec(b_out.shape, lambda b, t: (0, 0)),
            ],
            out_specs=pl.BlockSpec((None, t_tile, ncls_pad),
                                   lambda b, t: (b, t, 0)),
        ),
        compiler_params=pltpu.CompilerParams(
            dimension_semantics=("parallel", "parallel"),
            vmem_limit_bytes=64 * 1024 * 1024),
    )(x_tiles, w_in, b_in, w_stack, b_conv, w_out, b_out)

    return out_padded[:, :T, :n_class]


def convbank_reference(features, params, kernels):
    """Pure-JAX reference mirroring the PyTorch forward (dropout p=0), using the
    same bf16-operand / f32-accumulate precision as the kernel."""
    bf16, f32 = jnp.bfloat16, jnp.float32
    x = features.astype(bf16)
    h = jnp.dot(x, params["w_in"].astype(bf16), preferred_element_type=f32)
    h = jnp.maximum(h + params["b_in"], 0.0).astype(bf16)          # (B, T, H)
    B, T, H = h.shape
    feats = []
    for i, k in enumerate(kernels):
        pad = k // 2
        hp = jnp.pad(h, ((0, 0), (pad, pad), (0, 0)))
        w_c = params[f"w_conv{i}"].astype(bf16)                    # (k, H, C)
        acc = jnp.zeros((B, T, w_c.shape[2]), f32)
        for dt in range(k):
            acc = acc + jnp.einsum("bth,hc->btc", hp[:, dt:dt + T, :], w_c[dt],
                                   preferred_element_type=f32)
        feats.append(acc + params[f"b_conv{i}"])
    hidden = jnp.maximum(jnp.concatenate(feats, axis=-1), 0.0).astype(bf16)
    return (jnp.einsum("btd,dc->btc", hidden, params["w_out"].astype(bf16),
                       preferred_element_type=f32) + params["b_out"])


if __name__ == "__main__":
    # Small config consistent with the module (odd kernels -> same-length conv).
    B, T = 2, 64
    input_dim = 32
    hidden_size = 32
    cnn_size = 32
    kernels = [3, 5]
    output_class_num = 8
    t_tile = 32      # -> grid (B, T//t_tile) = (2, 2): 4 independent parallel steps

    key = jax.random.PRNGKey(0)
    ks = jax.random.split(key, 2 + 2 * len(kernels) + 2 + 1)

    params = {
        "w_in": 0.1 * jax.random.normal(ks[0], (input_dim, hidden_size), jnp.float32),
        "b_in": 0.1 * jax.random.normal(ks[1], (1, hidden_size), jnp.float32),
    }
    for i, k in enumerate(kernels):
        # PyTorch Conv1d weight is (out_ch, in_ch, k); stored here as (k, in_ch, out_ch)
        # so each tap is a ready-to-use (H, C) matmul operand.
        params[f"w_conv{i}"] = 0.1 * jax.random.normal(
            ks[2 + 2 * i], (k, hidden_size, cnn_size), jnp.float32)
        params[f"b_conv{i}"] = 0.1 * jax.random.normal(
            ks[3 + 2 * i], (1, cnn_size), jnp.float32)
    params["w_out"] = 0.1 * jax.random.normal(
        ks[2 + 2 * len(kernels)], (cnn_size * len(kernels), output_class_num),
        jnp.float32)
    params["b_out"] = 0.1 * jax.random.normal(
        ks[3 + 2 * len(kernels)], (1, output_class_num), jnp.float32)

    features = jax.random.normal(ks[-1], (B, T, input_dim), jnp.float32)

    out = convbank_forward(features, params, kernels, t_tile=t_tile)
    out = jax.block_until_ready(out)

    ref = convbank_reference(features, params, kernels)
    np.testing.assert_allclose(np.asarray(out), np.asarray(ref),
                               rtol=2e-3, atol=2e-3)

    print("KERNEL_OK")
</pallas_src>

<mosaic_0001>
module attributes {stable_mosaic.version = 11 : i64} {
  func.func @_convbank_kernel(%arg0: i32, %arg1: i32, %arg2: memref<1x1x36x32xbf16, #tpu.memory_space<vmem>>, %arg3: memref<32x32xbf16, #tpu.memory_space<vmem>>, %arg4: memref<1x32xf32, #tpu.memory_space<vmem>>, %arg5: memref<32x256xbf16, #tpu.memory_space<vmem>>, %arg6: memref<1x64xf32, #tpu.memory_space<vmem>>, %arg7: memref<64x128xbf16, #tpu.memory_space<vmem>>, %arg8: memref<1x128xf32, #tpu.memory_space<vmem>>, %arg9: memref<1x32x128xf32, #tpu.memory_space<vmem>>) attributes {dimension_semantics = [#tpu.dimension_semantics<parallel>, #tpu.dimension_semantics<parallel>], iteration_bounds = array<i64: 2, 2>, scalar_prefetch = 0 : i64, scratch_operands = 0 : i64, tpu.core_type = #tpu.core_type<tc>, window_params = [{transform_indices = @transform_0, window_bounds = array<i64: 1, 1, 36, 32>}, {pipeline_mode = #tpu.pipeline_mode<synchronous>, transform_indices = @transform_1, window_bounds = array<i64: 32, 32>}, {pipeline_mode = #tpu.pipeline_mode<synchronous>, transform_indices = @transform_2, window_bounds = array<i64: 1, 32>}, {pipeline_mode = #tpu.pipeline_mode<synchronous>, transform_indices = @transform_3, window_bounds = array<i64: 32, 256>}, {pipeline_mode = #tpu.pipeline_mode<synchronous>, transform_indices = @transform_4, window_bounds = array<i64: 1, 64>}, {pipeline_mode = #tpu.pipeline_mode<synchronous>, transform_indices = @transform_5, window_bounds = array<i64: 64, 128>}, {pipeline_mode = #tpu.pipeline_mode<synchronous>, transform_indices = @transform_6, window_bounds = array<i64: 1, 128>}, {transform_indices = @transform_7, window_bounds = array<i64: 1, 32, 128>}]} {
    %c0 = arith.constant 0 : index
    %c0_0 = arith.constant 0 : index
    %c0_1 = arith.constant 0 : index
    %c0_2 = arith.constant 0 : index
    %0 = vector.load %arg2[%c0, %c0_0, %c0_1, %c0_2] : memref<1x1x36x32xbf16, #tpu.memory_space<vmem>>, vector<1x1x36x32xbf16>
    %1 = vector.shape_cast %0 : vector<1x1x36x32xbf16> to vector<36x32xbf16>
    %c0_3 = arith.constant 0 : index
    %c0_4 = arith.constant 0 : index
    %2 = vector.load %arg3[%c0_3, %c0_4] : memref<32x32xbf16, #tpu.memory_space<vmem>>, vector<32x32xbf16>
    %cst = arith.constant dense<0.000000e+00> : vector<36x32xf32>
    %3 = tpu.matmul %1, %2, %cst {dimension_numbers = #tpu.dot_dimension_numbers<[1], [0], [0], [1], [0, 0, 1, 1], [], []>} : vector<36x32xbf16>, vector<32x32xbf16>, vector<36x32xf32> -> vector<36x32xf32>
    %c0_5 = arith.constant 0 : index
    %c0_6 = arith.constant 0 : index
    %4 = vector.load %arg4[%c0_5, %c0_6] : memref<1x32xf32, #tpu.memory_space<vmem>>, vector<1x32xf32>
    %5 = vector.broadcast %4 : vector<1x32xf32> to vector<36x32xf32>
    %6 = arith.addf %3, %5 : vector<36x32xf32>
    %cst_7 = arith.constant 0.000000e+00 : f32
    %7 = vector.broadcast %cst_7 : f32 to vector<36x32xf32>
    %8 = arith.maximumf %6, %7 : vector<36x32xf32>
    %c32_i32 = arith.constant 32 : i32
    %9 = arith.muli %arg1, %c32_i32 : i32
    %10 = tpu.iota {dimensions = array<i32: 0>} : vector<36x1xi32>
    %11 = vector.broadcast %9 : i32 to vector<36x1xi32>
    %12 = arith.addi %11, %10 : vector<36x1xi32>
    %c2_i32 = arith.constant 2 : i32
    %13 = vector.broadcast %c2_i32 : i32 to vector<36x1xi32>
    %14 = arith.subi %12, %13 : vector<36x1xi32>
    %c0_i32 = arith.constant 0 : i32
    %15 = vector.broadcast %c0_i32 : i32 to vector<36x1xi32>
    %16 = arith.cmpi sge, %14, %15 : vector<36x1xi32>
    %c64_i32 = arith.constant 64 : i32
    %17 = vector.broadcast %c64_i32 : i32 to vector<36x1xi32>
    %18 = arith.cmpi slt, %14, %17 : vector<36x1xi32>
    %19 = arith.andi %16, %18 : vector<36x1xi1>
    %cst_8 = arith.constant 0.000000e+00 : f32
    %20 = vector.shape_cast %19 : vector<36x1xi1> to vector<36x1xi1>
    %21 = vector.broadcast %20 : vector<36x1xi1> to vector<36x32xi1>
    %22 = vector.broadcast %cst_8 : f32 to vector<36x32xf32>
    %23 = arith.select %21, %8, %22 : vector<36x32xi1>, vector<36x32xf32>
    %24 = arith.truncf %23 : vector<36x32xf32> to vector<36x32xbf16>
    %c0_9 = arith.constant 0 : index
    %c0_10 = arith.constant 0 : index
    %25 = vector.load %arg5[%c0_9, %c0_10] : memref<32x256xbf16, #tpu.memory_space<vmem>>, vector<32x256xbf16>
    %cst_11 = arith.constant dense<0.000000e+00> : vector<36x256xf32>
    %26 = tpu.matmul %24, %25, %cst_11 {dimension_numbers = #tpu.dot_dimension_numbers<[1], [0], [0], [1], [0, 0, 1, 1], [], []>} : vector<36x32xbf16>, vector<32x256xbf16>, vector<36x256xf32> -> vector<36x256xf32>
    %cst_12 = arith.constant 0.000000e+00 : f32
    %27 = vector.broadcast %cst_12 : f32 to vector<32x32xf32>
    %28 = vector.extract_strided_slice %26 {offsets = [1, 0], sizes = [32, 32], strides = [1, 1]} : vector<36x256xf32> to vector<32x32xf32>
    %29 = arith.addf %27, %28 : vector<32x32xf32>
    %30 = vector.extract_strided_slice %26 {offsets = [2, 32], sizes = [32, 32], strides = [1, 1]} : vector<36x256xf32> to vector<32x32xf32>
    %31 = arith.addf %29, %30 : vector<32x32xf32>
    %32 = vector.extract_strided_slice %26 {offsets = [3, 64], sizes = [32, 32], strides = [1, 1]} : vector<36x256xf32> to vector<32x32xf32>
    %33 = arith.addf %31, %32 : vector<32x32xf32>
    %cst_13 = arith.constant 0.000000e+00 : f32
    %34 = vector.broadcast %cst_13 : f32 to vector<32x32xf32>
    %35 = vector.extract_strided_slice %26 {offsets = [0, 96], sizes = [32, 32], strides = [1, 1]} : vector<36x256xf32> to vector<32x32xf32>
    %36 = arith.addf %34, %35 : vector<32x32xf32>
    %37 = vector.extract_strided_slice %26 {offsets = [1, 128], sizes = [32, 32], strides = [1, 1]} : vector<36x256xf32> to vector<32x32xf32>
    %38 = arith.addf %36, %37 : vector<32x32xf32>
    %39 = vector.extract_strided_slice %26 {offsets = [2, 160], sizes = [32, 32], strides = [1, 1]} : vector<36x256xf32> to vector<32x32xf32>
    %40 = arith.addf %38, %39 : vector<32x32xf32>
    %41 = vector.extract_strided_slice %26 {offsets = [3, 192], sizes = [32, 32], strides = [1, 1]} : vector<36x256xf32> to vector<32x32xf32>
    %42 = arith.addf %40, %41 : vector<32x32xf32>
    %43 = vector.extract_strided_slice %26 {offsets = [4, 224], sizes = [32, 32], strides = [1, 1]} : vector<36x256xf32> to vector<32x32xf32>
    %44 = arith.addf %42, %43 : vector<32x32xf32>
    %45 = tpu.concatenate %33, %44 in 1 : vector<32x32xf32>, vector<32x32xf32> -> vector<32x64xf32>
    %c0_14 = arith.constant 0 : index
    %c0_15 = arith.constant 0 : index
    %46 = vector.load %arg6[%c0_14, %c0_15] : memref<1x64xf32, #tpu.memory_space<vmem>>, vector<1x64xf32>
    %47 = vector.broadcast %46 : vector<1x64xf32> to vector<32x64xf32>
    %48 = arith.addf %45, %47 : vector<32x64xf32>
    %cst_16 = arith.constant 0.000000e+00 : f32
    %49 = vector.broadcast %cst_16 : f32 to vector<32x64xf32>
    %50 = arith.maximumf %48, %49 : vector<32x64xf32>
    %51 = arith.truncf %50 : vector<32x64xf32> to vector<32x64xbf16>
    %c0_17 = arith.constant 0 : index
    %c0_18 = arith.constant 0 : index
    %52 = vector.load %arg7[%c0_17, %c0_18] : memref<64x128xbf16, #tpu.memory_space<vmem>>, vector<64x128xbf16>
    %cst_19 = arith.constant dense<0.000000e+00> : vector<32x128xf32>
    %53 = tpu.matmul %51, %52, %cst_19 {dimension_numbers = #tpu.dot_dimension_numbers<[1], [0], [0], [1], [0, 0, 1, 1], [], []>} : vector<32x64xbf16>, vector<64x128xbf16>, vector<32x128xf32> -> vector<32x128xf32>
    %c0_20 = arith.constant 0 : index
    %c0_21 = arith.constant 0 : index
    %54 = vector.load %arg8[%c0_20, %c0_21] : memref<1x128xf32, #tpu.memory_space<vmem>>, vector<1x128xf32>
    %55 = vector.broadcast %54 : vector<1x128xf32> to vector<32x128xf32>
    %56 = arith.addf %53, %55 : vector<32x128xf32>
    %c0_22 = arith.constant 0 : index
    %c0_23 = arith.constant 0 : index
    %c0_24 = arith.constant 0 : index
    %57 = vector.load %arg9[%c0_22, %c0_23, %c0_24] : memref<1x32x128xf32, #tpu.memory_space<vmem>>, vector<1x32x128xf32>
    %58 = vector.shape_cast %57 : vector<1x32x128xf32> to vector<32x128xf32>
    %59 = vector.shape_cast %56 : vector<32x128xf32> to vector<1x32x128xf32>
    tpu.vector_store %arg9[%c0_22, %c0_23, %c0_24], %59 {strides = array<i32>} : memref<1x32x128xf32, #tpu.memory_space<vmem>>, vector<1x32x128xf32>,
    return
  }
  func.func @transform_0(%arg0: i32, %arg1: i32) -> (i32, i32, i32, i32) {
    %c0_i32 = arith.constant 0 : i32
    %c0_i32_0 = arith.constant 0 : i32
    %c0_i32_1 = arith.constant 0 : i32
    return %arg0, %arg1, %c0_i32, %c0_i32_0 : i32, i32, i32, i32
  }
  func.func @transform_1(%arg0: i32, %arg1: i32) -> (i32, i32) {
    %c0_i32 = arith.constant 0 : i32
    %c0_i32_0 = arith.constant 0 : i32
    %c0_i32_1 = arith.constant 0 : i32
    return %c0_i32, %c0_i32_0 : i32, i32
  }
  func.func @transform_2(%arg0: i32, %arg1: i32) -> (i32, i32) {
    %c0_i32 = arith.constant 0 : i32
    %c0_i32_0 = arith.constant 0 : i32
    %c0_i32_1 = arith.constant 0 : i32
    return %c0_i32, %c0_i32_0 : i32, i32
  }
  func.func @transform_3(%arg0: i32, %arg1: i32) -> (i32, i32) {
    %c0_i32 = arith.constant 0 : i32
    %c0_i32_0 = arith.constant 0 : i32
    %c0_i32_1 = arith.constant 0 : i32
    return %c0_i32, %c0_i32_0 : i32, i32
  }
  func.func @transform_4(%arg0: i32, %arg1: i32) -> (i32, i32) {
    %c0_i32 = arith.constant 0 : i32
    %c0_i32_0 = arith.constant 0 : i32
    %c0_i32_1 = arith.constant 0 : i32
    return %c0_i32, %c0_i32_0 : i32, i32
  }
  func.func @transform_5(%arg0: i32, %arg1: i32) -> (i32, i32) {
    %c0_i32 = arith.constant 0 : i32
    %c0_i32_0 = arith.constant 0 : i32
    %c0_i32_1 = arith.constant 0 : i32
    return %c0_i32, %c0_i32_0 : i32, i32
  }
  func.func @transform_6(%arg0: i32, %arg1: i32) -> (i32, i32) {
    %c0_i32 = arith.constant 0 : i32
    %c0_i32_0 = arith.constant 0 : i32
    %c0_i32_1 = arith.constant 0 : i32
    return %c0_i32, %c0_i32_0 : i32, i32
  }
  func.func @transform_7(%arg0: i32, %arg1: i32) -> (i32, i32, i32) {
    %c0_i32 = arith.constant 0 : i32
    %c0_i32_0 = arith.constant 0 : i32
    return %arg0, %arg1, %c0_i32 : i32, i32, i32
  }
}

</mosaic_0001>

<bundles_post_ra>
// kernel: tpu_custom_call.1
= control target key start
LH: loop header
LB: loop body
LE: loop exit
PB: predicated region body
PF: predicated region fallthrough
CT: control target
= control target key end

     0   :  { %s2277_s0 = inlined_call_operand.hbm [shape: bf16[2,2,36,32], index: 0, kind: input, shape index: {}]   ;;  %s2278_s1 = inlined_call_operand.hbm [shape: bf16[32,32], index: 1, kind: input, shape index: {}]   ;;  %s2279_s2 = inlined_call_operand.hbm [shape: f32[1,32], index: 2, kind: input, shape index: {}]   ;;  %s2280_s3 = inlined_call_operand.hbm [shape: bf16[32,256], index: 3, kind: input, shape index: {}]   ;;  %s2281_s4 = inlined_call_operand.hbm [shape: f32[1,64], index: 4, kind: input, shape index: {}]   ;;  %s2282_s5 = inlined_call_operand.hbm [shape: bf16[64,128], index: 5, kind: input, shape index: {}]   ;;  %s2283_s6 = inlined_call_operand.hbm [shape: f32[1,128], index: 6, kind: input, shape index: {}]   ;;  %s2284_s7 = inlined_call_operand.hbm [shape: f32[2,64,128], index: 7, kind: output, shape index: {}]  }
   0x1   :  { %2296 = sst [smem:[#allocation22_spill]] %s2278_s1 }
   0x2   :  { %2297 = sst [smem:[#allocation23_spill]] %s2279_s2 }
   0x3   :  { %2298 = sst [smem:[#allocation24_spill]] %s2280_s3 }
   0x4   :  { %2299 = sst [smem:[#allocation25_spill]] %s2281_s4 }
   0x5   :  { %2300 = sst [smem:[#allocation26_spill]] %s2282_s5 }
   0x6   :  { %2301 = sst [smem:[#allocation27_spill]] %s2283_s6 }
   0x7   :  { %2302 = sst [smem:[#allocation28_spill]] %s2284_s7 }
   0x8   :  { %12 = vsyncpa [#allocation3], 0 }
   0x9   :  { %14 = vsyncpa [#allocation3 + $0x1], 0 }
   0xa   :  { %15 = vsyncpa [#allocation6], 0 }
   0xb   :  { %16 = vsyncpa [#allocation9], 0 }
   0xc   :  { %17 = vsyncpa [#allocation12], 0 }
   0xd   :  { %18 = vsyncpa [#allocation4], 0 }
   0xe   :  { %20 = vsyncpa [#allocation4 + $0x1], 0  ;;  %s1793_s24 = smov 0   ;;  %s1795_s25 = smov 0  }
   0xf   :  { %s1797_s26 = smov 0   ;;  %s1799_s27 = smov 0  }
  0x10   :  { %s1801_s28 = smov 0   ;;  %s1803_s29 = smov 0  }
  0x11   :  { %s1805_s30 = smov 0   ;;  %s1807_s8 = smov 0  }
  0x12 LB: > { %2303 = sst [smem:[#allocation20_spill]] %s1719_s28  ;;  %s2288_s9 = sadd.s32 4294967295, %s1731_s8   ;;  %s1731_s8 = sphi %s1807_s8, %s26_s8   ;;  %s1727_s30 = sphi %s1805_s30, %s2337_s30   ;;  %s1723_s29 = sphi %s1803_s29, %s2336_s29   ;;  %s1719_s28 = sphi %s1801_s28, %s2335_s28   ;;  %s1715_s27 = sphi %s1799_s27, %s2334_s27   ;;  %s1711_s26 = sphi %s1797_s26, %s2333_s26   ;;  %s1707_s25 = sphi %s1795_s25, %s2332_s25   ;;  %s1703_s24 = sphi %s1793_s24, %s2331_s24  }
  0x13   : > { %p1161_p0 = scmp.ge.s32.totalorder %s1731_s8, 1  ;;  %p1837_p1 = scmp.eq.s32.totalorder %s2288_s9, 0 }
  0x14   : > { %p225_p2 = scmp.lt.s32.totalorder %s1731_s8, 5  ;;  %s1733_s12 = smov [#allocation5]  }
  0x15   : > { %s2304_s10 = scalar_select %p1837_p1, 1, 0 }
  0x16   : > { %p1842_p3 = pnand %p1161_p0, %p225_p2  ;;  %s237_s13 = sshll.u32 %s1733_s12, 4  ;;  %s238_s13 = int_to_ptr.vmem [resolvable:$true] %s237_s13 }
  0x17   : > { %s1734_s15 = smov [#allocation8]   ;;  %s2307_s1 = sld [smem:[#allocation22_spill]] }
  0x18   : > { %s2305_s11 = scalar_select %p1842_p3, 1, 0 }
  0x19   : > { %p1285_p4 = pneg %p1842_p3  ;;  %s261_s16 = sshll.u32 %s1734_s15, 4  ;;  %s1854_s16 = int_to_ptr.vmem [resolvable:$true] %s261_s16 }
  0x1b   : > { %p1850_p5 = pnand %p1285_p4, %p1837_p1 }
  0x1d   : > { %s1423_s19 = scalar_lea.hbm %s2307_s1, 256  ;;  %p1864_p7 = pneg %p1850_p5 }
  0x1e   : > { %p1424_p6 = scmp.ne.s32.totalorder %s2307_s1, %s1423_s19  ;;  %p1430_p10 = scmp.lt.u32.totalorder %s1423_s19, %s2307_s1 }
  0x20   : > { %p1426_p8 = pnand %p1864_p7, %p1424_p6 }
  0x22   : > { %p1427_p9 = pneg %p1426_p8 }
  0x24   : > { %p1432_p11 = pnand %p1430_p10, %p1427_p9 }
  0x26   : > { %1435 = shalt.err (!%p1432_p11)
}
  0x27   : > { %s1436_s15 = scalar_lea.vmem %s238_s13, 256  ;;  %p1444_p2 = scmp.lt.s32.totalorder %s238_s13, %s238_s13 }
  0x28   : > { %p1437_p12 = scmp.ne.s32.totalorder %s238_s13, %s1436_s15  ;;  %p1445_p4 = scmp.lt.s32.totalorder %s1436_s15, %s1436_s15 }
  0x2a   : > { %p1439_p13 = pnand %p1437_p12, %p1864_p7  ;;  %p1446_p3 = por %p1445_p4, %p1444_p2 }
  0x2c   : > { %p1440_p0 = pneg %p1439_p13 }
  0x2e   : > { %p1447_p1 = pnand %p1446_p3, %p1440_p0 }
  0x30   : > { %1450 = shalt.err (!%p1447_p1)
}
  0x31   : > { %s2290_s17 = smov 64   ;;  %s2292_s18 = smov 4  }
  0x32   : > { %1288 = dma.hbm_to_vmem [thread:$0]  (!%p1850_p5), %s2307_s1, 256, %s238_s13, [#allocation6], %s2290_s17, %s2290_s17, %s2292_s18  }
  0x33   : > { %s2309_s3 = sld [smem:[#allocation24_spill]] }
  0x39   : > { %s1451_s12 = scalar_lea.hbm %s2309_s3, 512 }
  0x3a   : > { %p1452_p1 = scmp.ne.s32.totalorder %s2309_s3, %s1451_s12  ;;  %p1458_p8 = scmp.lt.u32.totalorder %s1451_s12, %s2309_s3 }
  0x3c   : > { %p1454_p3 = pnand %p1452_p1, %p1864_p7 }
  0x3e   : > { %p1455_p6 = pneg %p1454_p3 }
  0x40   : > { %p1460_p9 = pnand %p1458_p8, %p1455_p6 }
  0x42   : > { %1463 = shalt.err (!%p1460_p9)
}
  0x43   : > { %s1464_s13 = scalar_lea.vmem %s1854_s16, 512  ;;  %p1472_p13 = scmp.lt.s32.totalorder %s1854_s16, %s1854_s16 }
  0x44   : > { %p1465_p10 = scmp.ne.s32.totalorder %s1854_s16, %s1464_s13  ;;  %p1473_p0 = scmp.lt.s32.totalorder %s1464_s13, %s1464_s13 }
  0x46   : > { %p1467_p11 = pnand %p1465_p10, %p1864_p7  ;;  %p1474_p2 = por %p1473_p0, %p1472_p13 }
  0x48   : > { %p1468_p12 = pneg %p1467_p11 }
  0x4a   : > { %p1475_p4 = pnand %p1474_p2, %p1468_p12 }
  0x4c   : > { %1478 = shalt.err (!%p1475_p4)
}
  0x4d   : > { %s1737_s9 = smov 128   ;;  %s1738_s7 = smov 8  }
  0x4e   : > { %1294 = dma.hbm_to_vmem [thread:$0]  (!%p1850_p5), %s2309_s3, 512, %s1854_s16, [#allocation9], %s1737_s9, %s1737_s9, %s1738_s7  }
  0x4f   : > { %s1739_s20 = smov [#allocation11]   ;;  %s1740_s23 = smov [#allocation7]  }
  0x50   : > { %s285_s21 = sshll.u32 %s1739_s20, 4  ;;  %s251_s12 = sshll.u32 %s1740_s23, 4  ;;  %s286_s21 = int_to_ptr.vmem [resolvable:$true] %s285_s21  ;;  %s1906_s12 = int_to_ptr.vmem [resolvable:$true] %s251_s12 }
  0x51   : > { %s2310_s5 = sld [smem:[#allocation26_spill]] }
  0x57   : > { %s1479_s17 = scalar_lea.hbm %s2310_s5, 512 }
  0x58   : > { %p1480_p1 = scmp.ne.s32.totalorder %s2310_s5, %s1479_s17  ;;  %p1486_p8 = scmp.lt.u32.totalorder %s1479_s17, %s2310_s5 }
  0x5a   : > { %p1482_p3 = pnand %p1480_p1, %p1864_p7 }
  0x5c   : > { %p1483_p6 = pneg %p1482_p3 }
  0x5e   : > { %p1488_p9 = pnand %p1486_p8, %p1483_p6 }
  0x60   : > { %1491 = shalt.err (!%p1488_p9)
}
  0x61   : > { %s1492_s9 = scalar_lea.vmem %s286_s21, 512  ;;  %p1500_p13 = scmp.lt.s32.totalorder %s286_s21, %s286_s21 }
  0x62   : > { %p1493_p10 = scmp.ne.s32.totalorder %s286_s21, %s1492_s9  ;;  %p1501_p0 = scmp.lt.s32.totalorder %s1492_s9, %s1492_s9 }
  0x64   : > { %p1495_p11 = pnand %p1493_p10, %p1864_p7  ;;  %p1502_p2 = por %p1501_p0, %p1500_p13 }
  0x66   : > { %p1496_p12 = pneg %p1495_p11 }
  0x68   : > { %p1503_p4 = pnand %p1502_p2, %p1496_p12 }
  0x6a   : > { %1506 = shalt.err (!%p1503_p4)
}
  0x6b   : > { %s2311_s1 = smov 4   ;;  %s2312_s18 = smov 64  }
  0x6c   : > { %1300 = dma.hbm_to_vmem [thread:$0]  (!%p1850_p5), %s2310_s5, 512, %s286_s21, [#allocation12], %s2312_s18, %s2312_s18, %s2311_s1  }
  0x6d   : > { %s2313_s2 = sld [smem:[#allocation23_spill]] }
  0x73   : > { %s1507_s23 = scalar_lea.hbm %s2313_s2, 16 }
  0x74   : > { %p1508_p1 = scmp.ne.s32.totalorder %s2313_s2, %s1507_s23  ;;  %p1514_p8 = scmp.lt.u32.totalorder %s1507_s23, %s2313_s2 }
  0x76   : > { %p1510_p3 = pnand %p1508_p1, %p1864_p7 }
  0x78   : > { %p1511_p6 = pneg %p1510_p3 }
  0x7a   : > { %p1516_p9 = pnand %p1514_p8, %p1511_p6 }
  0x7c   : > { %1519 = shalt.err (!%p1516_p9)
}
  0x7d   : > { %s1520_s21 = scalar_lea.vmem %s1906_s12, 16  ;;  %s1527_s9 = scalar_lea.vmem %s1906_s12, 32 }
  0x7e   : > { %p1521_p10 = scmp.ne.s32.totalorder %s1906_s12, %s1520_s21  ;;  %p1528_p13 = scmp.lt.s32.totalorder %s1906_s12, %s1906_s12 }
  0x7f   : > { %p1529_p0 = scmp.lt.s32.totalorder %s1527_s9, %s1520_s21 }
  0x80   : > { %p1523_p11 = pnand %p1521_p10, %p1864_p7 }
  0x81   : > { %p1530_p2 = por %p1529_p0, %p1528_p13 }
  0x82   : > { %p1524_p12 = pneg %p1523_p11 }
  0x84   : > { %p1531_p4 = pnand %p1530_p2, %p1524_p12 }
  0x86   : > { %1534 = shalt.err (!%p1531_p4)
}
  0x87   : > { %1291 = dma.hbm_to_vmem [thread:$0]  (!%p1850_p5), %s2313_s2, 16, %s1906_s12, [#allocation6]  }
  0x88   : > { %s1741_s19 = smov [#allocation10]   ;;  %s1742_s23 = smov [#allocation13]  }
  0x89   : > { %s275_s20 = sshll.u32 %s1741_s19, 4  ;;  %s299_s15 = sshll.u32 %s1742_s23, 4  ;;  %s276_s20 = int_to_ptr.vmem [resolvable:$true] %s275_s20  ;;  %s1953_s15 = int_to_ptr.vmem [resolvable:$true] %s299_s15 }
  0x8a   : > { %s2314_s4 = sld [smem:[#allocation25_spill]] }
  0x90   : > { %s1535_s16 = scalar_lea.hbm %s2314_s4, 16 }
  0x91   : > { %p1536_p1 = scmp.ne.s32.totalorder %s2314_s4, %s1535_s16  ;;  %p1542_p8 = scmp.lt.u32.totalorder %s1535_s16, %s2314_s4 }
  0x93   : > { %p1538_p3 = pnand %p1536_p1, %p1864_p7 }
  0x95   : > { %p1539_p6 = pneg %p1538_p3 }
  0x97   : > { %p1544_p9 = pnand %p1542_p8, %p1539_p6 }
  0x99   : > { %1547 = shalt.err (!%p1544_p9)
}
  0x9a   : > { %s1548_s17 = scalar_lea.vmem %s276_s20, 16  ;;  %s1555_s19 = scalar_lea.vmem %s276_s20, 32 }
  0x9b   : > { %p1549_p10 = scmp.ne.s32.totalorder %s276_s20, %s1548_s17  ;;  %p1556_p13 = scmp.lt.s32.totalorder %s276_s20, %s276_s20 }
  0x9c   : > { %p1557_p0 = scmp.lt.s32.totalorder %s1555_s19, %s1548_s17 }
  0x9d   : > { %p1551_p11 = pnand %p1549_p10, %p1864_p7 }
  0x9e   : > { %p1558_p2 = por %p1557_p0, %p1556_p13 }
  0x9f   : > { %p1552_p12 = pneg %p1551_p11 }
  0xa1   : > { %p1559_p4 = pnand %p1558_p2, %p1552_p12 }
  0xa3   : > { %1562 = shalt.err (!%p1559_p4)
}
  0xa4   : > { %1297 = dma.hbm_to_vmem [thread:$0]  (!%p1850_p5), %s2314_s4, 16, %s276_s20, [#allocation9]  }
  0xa5   : > { %s2315_s6 = sld [smem:[#allocation27_spill]] }
  0xab   : > { %s1563_s21 = scalar_lea.hbm %s2315_s6, 16 }
  0xac   : > { %p1564_p1 = scmp.ne.s32.totalorder %s2315_s6, %s1563_s21  ;;  %p1570_p8 = scmp.lt.u32.totalorder %s1563_s21, %s2315_s6 }
  0xae   : > { %p1566_p3 = pnand %p1564_p1, %p1864_p7 }
  0xb0   : > { %p1567_p6 = pneg %p1566_p3 }
  0xb2   : > { %p1572_p9 = pnand %p1570_p8, %p1567_p6 }
  0xb4   : > { %1575 = shalt.err (!%p1572_p9)
}
  0xb5   : > { %s1576_s20 = scalar_lea.vmem %s1953_s15, 16  ;;  %s1583_s19 = scalar_lea.vmem %s1953_s15, 32 }
  0xb6   : > { %p1577_p10 = scmp.ne.s32.totalorder %s1953_s15, %s1576_s20  ;;  %p1584_p13 = scmp.lt.s32.totalorder %s1953_s15, %s1953_s15 }
  0xb7   : > { %p1585_p0 = scmp.lt.s32.totalorder %s1583_s19, %s1576_s20 }
  0xb8   : > { %p1579_p11 = pnand %p1577_p10, %p1864_p7 }
  0xb9   : > { %p1586_p2 = por %p1585_p0, %p1584_p13 }
  0xba   : > { %p1580_p12 = pneg %p1579_p11 }
  0xbc   : > { %p1587_p4 = pnand %p1586_p2, %p1580_p12 }
  0xbe   : > { %1590 = shalt.err (!%p1587_p4)
}
  0xbf   : > { %1303 = dma.hbm_to_vmem [thread:$0]  (!%p1850_p5), %s2315_s6, 16, %s1953_s15, [#allocation12]  }
  0xc0   : > { %s1160_s22 = sadd.s32 4294967294, %s1731_s8   ;;  %s35_s14 = sadd.s32 1, %s1723_s29 }
  0xc1   : > { %p36_p7 = scmp.ge.s32.totalorder %s35_s14, 2  ;;  %s38_s28 = sadd.s32 1, %s1727_s30 }
  0xc2   : > { %s47_s16 = sadd.s32 1, %s1711_s26  ;;  %p54_p1 = scmp.ne.s32.totalorder %s1711_s26, %s1707_s25 }
  0xc3   : > { %s2339_s14 = smov (%p36_p7, %s35_s14), 0  ;;  %s2341_s28 = smov (!%p36_p7, %s38_s28), %s1727_s30 }
  0xc4   : > { %s43_s21 = ssub.s32 %s1723_s29, %s2339_s14  ;;  %p55_p3 = scmp.eq.s32.totalorder %s1731_s8, 0 }
  0xc5   : > { %p40_p6 = scmp.ge.s32.totalorder %s2341_s28, 2  ;;  %p60_p5 = scmp.ne.s32.totalorder %s1707_s25, %s1703_s24 }
  0xc6   : > { %p2011_p8 = por %p55_p3, %p54_p1  ;;  %s2317_s9 = sadd.s32 4294967295, %s1731_s8  }
  0xc7   : > { %p212_p9 = scmp.eq.s32.totalorder %s2317_s9, 3  ;;  %s2343_s28 = smov (%p40_p6, %s2341_s28), 0 }
  0xc8   : > { %2318 = sst [smem:[#allocation21_spill]] %s2343_s28  ;;  %p2319_p10 = scmp.ne.s32.totalorder %s2304_s10, 0 }
  0xc9   : > { %p2025_p12 = por %p212_p9, %p54_p1  ;;  %s42_s17 = ssub.s32 %s1727_s30, %s2343_s28 }
  0xca   : > { %p2021_p11 = por %p2319_p10, %p60_p5  ;;  %p218_p13 = scmp.eq.s32.totalorder %s1160_s22, 3 }
  0xcb   : > { %s2321_s12 = scalar_select %p2025_p12, 1, 0 }
  0xcc   : > { %s44_s20 = sor.u32 %s43_s21, %s42_s17  ;;  %p1318_p0 = scmp.lt.s32.totalorder %s1731_s8, 4 }
  0xcd   : > { %p45_p2 = scmp.eq.s32.totalorder %s44_s20, 0  ;;  %p2032_p4 = por %p218_p13, %p60_p5 }
  0xce   : > { %s310_s23 = sand.u32 1, %s1711_s26   ;;  %s1254_s13 = smul.u32 5, %s1723_s29 }
  0xcf   : > { %s2322_s19 = scalar_select %p2032_p4, 1, 0 }
  0xd0   : > { %s2039_s9 = scalar_select %p45_p2, %s1711_s26, %s47_s16  }
  0xd1   : > { %s1253_s2 = smul.u32 20, %s310_s23  ;;  %p2044_p7 = pnand %p1318_p0, %p2011_p8 }
  0xd2   : > { %s1255_s3 = smul.u32 10, %s1727_s30  ;;  %s2055_s15 = scalar_lea.sflag [#allocation3], %s310_s23 }
  0xd3   : > { %s314_s21 = scalar_lea.vmem [#allocation2], %s1253_s2  ;;  %p1593_p3 = pneg %p2044_p7 }
  0xd4   : > { %s320_s22 = sadd.s32 %s1255_s3, %s1254_s13  ;;  %s323_s17 = sshll.u32 %s314_s21, 4  ;;  %s2048_s17 = int_to_ptr.vmem [resolvable:$true] %s323_s17 }
  0xd5   : > { %s1169_s20 = sshll.u32 %s320_s22, 6  ;;  %s1596_s5 = scalar_lea.hbm %s2277_s0, 1280 }
  0xd6   : > { %s2053_s16 = scalar_lea.hbm %s2277_s0, %s1169_s20 }
  0xd7   : > { %s1591_s28 = scalar_lea.hbm %s2053_s16, 320  ;;  %p1597_p8 = scmp.lt.u32.totalorder %s2053_s16, %s2277_s0 }
  0xd8   : > { %p1592_p1 = scmp.ne.s32.totalorder %s2053_s16, %s1591_s28  ;;  %p1598_p9 = scmp.lt.u32.totalorder %s1596_s5, %s1591_s28 }
  0xd9   : > { %p1600_p13 = scmp.lt.u32.totalorder %s1591_s28, %s2053_s16 }
  0xda   : > { %p1594_p6 = pnand %p1593_p3, %p1592_p1  ;;  %p1599_p10 = por %p1598_p9, %p1597_p8 }
  0xdc   : > { %p1595_p5 = pneg %p1594_p6  ;;  %p1601_p0 = por %p1600_p13, %p1599_p10 }
  0xde   : > { %p1602_p2 = pnand %p1601_p0, %p1595_p5 }
  0xe0   : > { %1605 = shalt.err (!%p1602_p2)
}
  0xe1   : > { %s1606_s23 = scalar_lea.vmem %s2048_s17, 320  ;;  %s1743_s22 = smov [#allocation2]  }
  0xe2   : > { %p1607_p1 = scmp.ne.s32.totalorder %s2048_s17, %s1606_s23  ;;  %s1611_s21 = sshll.u32 %s1743_s22, 4  ;;  %s1612_s21 = int_to_ptr.vmem [resolvable:$false] %s1611_s21 }
  0xe3   : > { %s1613_s20 = scalar_lea.vmem %s1612_s21, 640  ;;  %p1614_p12 = scmp.lt.s32.totalorder %s2048_s17, %s1612_s21 }
  0xe4   : > { %p1609_p6 = pnand %p1607_p1, %p1593_p3  ;;  %p1615_p8 = scmp.lt.s32.totalorder %s1613_s20, %s1606_s23 }
  0xe6   : > { %p1610_p4 = pneg %p1609_p6  ;;  %p1616_p9 = por %p1615_p8, %p1614_p12 }
  0xe8   : > { %p1617_p10 = pnand %p1616_p9, %p1610_p4 }
  0xea   : > { %1620 = shalt.err (!%p1617_p10)
}
  0xeb   : > { %1307 = dma.hbm_to_vmem [thread:$0]  (!%p2044_p7), %s2053_s16, 320, %s2048_s17, %s2055_s15, %s2312_s18, %s2312_s18, %s2311_s1  }
  0xec   : > { %p2324_p3 = scmp.ne.s32.totalorder %s2305_s11, 0 }
  0xed   : > { %s2089_s28 = sand.u32 (!%p2324_p3), 1, %s1707_s25  }
  0xee   : > { %335 = sbr.rel (%p2324_p3) target bundleno = 1211 (0x4bb), region = 48  ;;  %s338_s3 = scalar_lea.sflag (!%p2324_p3), [#allocation3], %s2089_s28 }
  0xef   : > { %s1256_s2 = smul.u32 (!%p2324_p3), 20, %s2089_s28 }
  0xf1   : > { %s341_s5 = scalar_lea.vmem (!%p2324_p3), [#allocation2], %s1256_s2 }
  0xf5   : > { %1682 = dma.done.wait (%p2021_p11), %s338_s3, 320  }
  0xf6   : > { %1684 = vsyncadd (%p2021_p11), %s338_s3, 4294966976  ;;  %p2325_p12 = scmp.ne.s32.totalorder %s2304_s10, 0 }
  0xf8   : > { %1686 = dma.done.wait (%p2325_p12), [#allocation6], 272  }
  0xf9   : > { %1688 = vsyncadd (%p2325_p12), [#allocation6], 4294967024 }
  0xfa   : > { %1690 = dma.done.wait (%p2325_p12), [#allocation9], 528  }
  0xfb   : > { %1692 = vsyncadd (%p2325_p12), [#allocation9], 4294966768 }
  0xfc   : > { %1694 = dma.done.wait (%p2325_p12), [#allocation12], 528  }
  0xfd   : > { %1696 = vsyncadd (%p2325_p12), [#allocation12], 4294966768  ;;  %v1744_v0 = vmov 0.0   ;;  %vm1745_vm0 = vmmov 0   ;;  %v1408_v1 = vld [vmem:[#allocation5] sm:$0xff]   ;;  %v1409_v2 = vld [vmem:[#allocation5 + $0x8] sm:$0xff]   ;;  %v511_v11 = vlaneseq }
  0xfe   : > { %1225 = vmatprep.subr.bf16.mxu0 %v1744_v0  ;;  %1229 = vmatprep.mubr.msk.bf16.mxu0 %vm1745_vm0, %v1744_v0  ;;  %v1410_v3 = vld [vmem:[%s341_s5] sm:$0xff]   ;;  %vm439_vm1 = vcmask 261120   ;;  %v1411_v4 = vld [vmem:[%s341_s5 + $0x8] sm:$0xff]   ;;  %v1412_v5 = vld [vmem:[%s341_s5 + $0x10] ss:$0 sps:$4 sm:$0x33]  }
  0xff   : > { %1226 = vmatpush3.bf16.msra.mxu0 %v1408_v1  ;;  %v1413_v6 = vld [vmem:[#allocation8 + $0x4] ss:$8 sps:$4 sm:$0xff]   ;;  %v1415_v7 = vld [vmem:[#allocation8] ss:$8 sps:$4 sm:$0xff]   ;;  %v1416_v8 = vld [vmem:[#allocation8 + $0x14] ss:$8 sps:$4 sm:$0xff]  }
 0x100   : > { %1227 = vmatprep.subr.bf16.mxu0 %v1744_v0  ;;  %594 = vmatprep.subr.bf16.mxu1 %v1413_v6  ;;  %v1418_v9 = vld [vmem:[#allocation8 + $0x10] ss:$8 sps:$4 sm:$0xff]   ;;  %v1746_v10 = vmov 0   ;;  %v512_v12 = vshrl.u32 %v511_v11, 7  ;;  %s1187_s4 = sshll.u32 %s1715_s27, 5  ;;  %s1747_s10 = smov 96  }
 0x101   : > { %595 = vmatpush1.bf16.msra.mxu1 %v1415_v7  ;;  %626 = vmatprep.mubr.bf16.mxu1 %v1746_v10  ;;  %v517_v13 = vstv %s1187_s4  ;;  %v1178_v21 = vld [vmem:[#allocation7] ss:$0 sm:$0xff]  ;;  %s1748_s11 = smov 64   ;;  %s1749_s1 = smov 32  }
 0x102   : > { %596 = vmatprep.subr.bf16.mxu1 %v1416_v8  ;;  %v513_v14 = vadd.s32 8, %v512_v12  ;;  %v518_v15 = vadd.s32 %v517_v13, %v512_v12  ;;  %v514_v18 = vadd.s32 16, %v512_v12  ;;  %v515_v20 = vadd.s32 24, %v512_v12  ;;  %s2326_s18 = sld [smem:[#allocation20_spill]]  ;;  %s1177_s7 = sshll.u32 %s2089_s28, 5 }
 0x103   : > { %1228 = vmatpush3.bf16.msra.mxu0 %v1409_v2  ;;  %v516_v31 = vadd.s32 32, %v512_v12  ;;  %s1209_s17 = sshll.u32 %s1715_s27, 2  ;;  %s395_s6 = scalar_lea.vmem [#allocation14], %s1177_s7 }
 0x104   : > { %v519_v16 = vadd.s32 %v517_v13, %v513_v14  ;;  %v1188_v17 = vadd.s32 4294967294, %v518_v15  ;;  %v520_v23 = vadd.s32 %v517_v13, %v514_v18  ;;  %v521_v26 = vadd.s32 %v517_v13, %v515_v20  ;;  %s1012_s13 = sshll.u32 %s395_s6, 4  ;;  %s2327_s21 = sld [smem:[#allocation28_spill]]  ;;  %s2218_s13 = int_to_ptr.vmem [resolvable:$true] %s1012_s13 }
 0x105   : > { %597 = vmatpush1.bf16.msra.mxu1 %v1418_v9  ;;  %v522_v37 = vadd.s32 %v517_v13, %v516_v31  ;;  %s997_s2 = scalar_lea.sflag [#allocation4], %s2089_s28  ;;  %s1621_s3 = scalar_lea.vmem %s2218_s13, 512 }
 0x106   : > { %1230 = vmatmul.mubr.msk.bf16.vlgmr.msra.gmra.mrb[0].mxu0 %vm439_vm1, %v1410_v3  ;;  %v1189_v19 = vadd.s32 4294967294, %v519_v16  ;;  %vm528_vm2 = vcmp.ge.s32.totalorder %v1188_v17, 0  ;;  %vm533_vm3 = vcmp.lt.s32.totalorder %v1188_v17, 64  ;;  %v1190_v32 = vadd.s32 4294967294, %v520_v23  ;;  %p1622_p11 = scmp.ne.s32.totalorder %s2218_s13, %s1621_s3  ;;  %p2328_p4 = scmp.ne.s32.totalorder %s2321_s12, 0 }
 0x107   : > { %1233 = vmatprep.mubr.msk.bf16.mxu0 %vm1745_vm0, %v1744_v0  ;;  %vm538_vm6 = vmand %vm528_vm2, %vm533_vm3  ;;  %v1191_v34 = vadd.s32 4294967294, %v521_v26  ;;  %v1192_v46 = vadd.s32 4294967294, %v522_v37  ;;  %vm665_vm2 = vcmask 1046528   ;;  %vm695_vm3 = vcmask 1045504   ;;  %s1750_s5 = smov [#allocation14]  }
 0x108   : > { %vm529_vm4 = vcmp.ge.s32.totalorder %v1189_v19, 0  ;;  %vm534_vm5 = vcmp.lt.s32.totalorder %v1189_v19, 64  ;;  %vm530_vm8 = vcmp.ge.s32.totalorder %v1190_v32, 0  ;;  %vm535_vm9 = vcmp.lt.s32.totalorder %v1190_v32, 64  ;;  %s1210_s16 = sshll.u32 %s2326_s18, 3  ;;  %p1623_p7 = pnand %p1622_p11, %p2328_p4 }
 0x109   : > { %vm539_vm7 = vmand %vm529_vm4, %vm534_vm5  ;;  %vm531_vm10 = vcmp.ge.s32.totalorder %v1191_v34, 0  ;;  %vm536_vm11 = vcmp.lt.s32.totalorder %v1191_v34, 64  ;;  %vm532_vm14 = vcmp.ge.s32.totalorder %v1192_v46, 0  ;;  %vm537_vm15 = vcmp.lt.s32.totalorder %v1192_v46, 64  ;;  %s1009_s15 = sadd.s32 %s1210_s16, %s1209_s17  ;;  %s1625_s4 = sshll.u32 %s1750_s5, 4  ;;  %s1626_s4 = int_to_ptr.vmem [resolvable:$false] %s1625_s4 }
 0x10a   : > { %vm540_vm12 = vmand %vm530_vm8, %vm535_vm9  ;;  %vm780_vm4 = vcmask 1044480   ;;  %vm806_vm5 = vcmask 1043456   ;;  %vm936_vm8 = vcmask 523264   ;;  %s1211_s23 = sshll.u32 %s1009_s15, 7  ;;  %p1624_p5 = pneg %p1623_p7 }
 0x10b   : > { %vm541_vm13 = vmand %vm531_vm10, %vm536_vm11  ;;  %s2223_s20 = scalar_lea.hbm %s2327_s21, %s1211_s23  ;;  %p1628_p13 = scmp.lt.s32.totalorder %s2218_s13, %s1626_s4 }
 0x10e   : > { %1234 = vmatmul.mubr.msk.bf16.gmra.mrb[4].mxu0 %vm439_vm1, %v1411_v4 }
 0x10f   : > { %1237 = vmatprep.mubr.msk.bf16.mxu0 %vm1745_vm0, %v1744_v0  ;;  %vm542_vm0 = vmand %vm532_vm14, %vm537_vm15 }
 0x116   : > { %1238 = vmatmul.mubr.msk.bf16.gmra.mrb[8].mxu0 %vm439_vm1, %v1412_v5 }
 0x1d9   : > { %v483_v22 = vpop.f32.mrb[0].mxu0 }
 0x1da   : > { %v484_v24 = vadd.f32 %v1178_v21, %v483_v22  ;;  %v1231_v25 = vpop.f32.mrb[1].mxu0 }
 0x1db   : > { %v486_v27 = vpop.f32.mrb[2].mxu0 }
 0x1dc   : > { %v505_v28 = vmax.f32 %v484_v24, 0.0  ;;  %v487_v29 = vadd.f32 %v1178_v21, %v486_v27  ;;  %v1232_v30 = vpop.f32.mrb[3].mxu0 }
 0x1de   : > { %v506_v33 = vmax.f32 %v487_v29, 0.0  ;;  %v553_v35 = vsel %vm538_vm6, %v505_v28, 0.0  ;;  %vm828_vm6 = vcmask 1040384  }
 0x1e0   : > { %v554_v36 = vsel %vm539_vm7, %v506_v33, 0.0  ;;  %vm891_vm7 = vsmask.f32 7424 }
 0x1e1   : > { %v558_v38 = vpack.c.bf16 %v554_v36, %v553_v35  ;;  %v491_v39 = vpop.f32.mrb[4].mxu0 }
 0x1e2   : > { %v492_v40 = vadd.f32 %v1178_v21, %v491_v39  ;;  %v1235_v41 = vpop.f32.mrb[5].mxu0 }
 0x1e3   : > { %v494_v42 = vpop.f32.mrb[6].mxu0  ;;  %1197 = vmatmul.mubr.msk.bf16.vlgmr.msra.gmra.mrb[0].mxu1 %vm439_vm1, %v558_v38 }
 0x1e4   : > { %v507_v43 = vmax.f32 %v492_v40, 0.0  ;;  %v495_v44 = vadd.f32 %v1178_v21, %v494_v42  ;;  %v1236_v45 = vpop.f32.mrb[7].mxu0  ;;  %636 = vmatprep.mubr.bf16.mxu1 %v1746_v10 }
 0x1e6   : > { %v508_v47 = vmax.f32 %v495_v44, 0.0  ;;  %v555_v48 = vsel %vm540_vm12, %v507_v43, 0.0 }
 0x1e8   : > { %v556_v49 = vsel %vm541_vm13, %v508_v47, 0.0 }
 0x1e9   : > { %v559_v50 = vpack.c.bf16 %v556_v49, %v555_v48  ;;  %v499_v51 = vpop.f32.mrb[8].mxu0 }
 0x1ea   : > { %v500_v52 = vadd.f32 %v1178_v21, %v499_v51  ;;  %v1239_v53 = vpop.f32.mrb[9].mxu0 }
 0x1eb   : > { %1198 = vmatmul.mubr.msk.bf16.gmra.mrb[4].mxu1 %vm439_vm1, %v559_v50  ;;  %v502_v54 = vpop.f32.mrb[10].mxu0 }
 0x1ec   : > { %v509_v55 = vmax.f32 %v500_v52, 0.0  ;;  %v1240_v56 = vpop.f32.mrb[11].mxu0  ;;  %646 = vmatprep.mubr.bf16.mxu1 %v1746_v10 }
 0x1ee   : > { %v557_v57 = vsel %vm542_vm0, %v509_v55, 0.0 }
 0x1ef   : > { %v560_v58 = vpack.c.bf16 %v557_v57, %v557_v57 }
 0x1f3   : > { %1199 = vmatmul.mubr.msk.bf16.gmra.mrb[8].mxu1 %vm439_vm1, %v560_v58 }
 0x2b6   : > { %v2119_v59 = vpop.f32.mrb[0].mxu1 }
 0x2b7   : > { %v630_v60 = vpop.f32.mrb[1].mxu1  ;;  %v666_v61 = vrot.slane %v2119_v59, 1  ;;  %v696_v62 = vrot.slane %v2119_v59, 2 }
 0x2b8   : > { %v755_v63 = vrot.slane %v630_v60, 2  ;;  %v781_v0 = vrot.slane %v630_v60, 3  ;;  %v2123_v1 = vpop.f32.mrb[2].mxu1  ;;  %v807_v2 = vrot.slane %v630_v60, 4  ;;  %v730_v6 = vrot.slane %v630_v60, 1 }
 0x2b9   : > { %v667_v3 = vrot.slane %v2123_v1, 1  ;;  %v697_v4 = vrot.slane %v2123_v1, 2  ;;  %v634_v5 = vpop.f32.mrb[3].mxu1 }
 0x2ba   : > { %v756_v7 = vrot.slane %v634_v5, 2  ;;  %v782_v8 = vrot.slane %v634_v5, 3  ;;  %v808_v9 = vrot.slane %v634_v5, 4  ;;  %v731_v10 = vrot.slane %v634_v5, 1 }
 0x2bb   : > { %v2128_v11 = vsel %vm665_vm2, %v666_v61, %v667_v3  ;;  %v2131_v12 = vsel %vm695_vm3, %v696_v62, %v697_v4 }
 0x2bc   : > { %v732_v13 = vsel %vm665_vm2, %v730_v6, %v731_v10  ;;  %v757_v14 = vsel %vm695_vm3, %v755_v63, %v756_v7  ;;  %v783_v15 = vsel %vm780_vm4, %v781_v0, %v782_v8  ;;  %v2137_v16 = vsel %vm806_vm5, %v807_v2, %v808_v9  ;;  %v1419_v2 = vld [vmem:[#allocation11] sm:$0xff]  }
 0x2bd   : > { %739 = vrot.lane.b32.xlu0 %v732_v13, %s1747_s10  ;;  %1241 = vmatprep.subr.bf16.mxu0 %v1419_v2 }
 0x2be   : > { %v2140_v17 = vpop.f32.mrb[4].mxu1  ;;  %1242 = vmatpush3.bf16.msra.mxu0 %v1419_v2 }
 0x2bf   : > { %v669_v18 = vrot.slane %v2140_v17, 1  ;;  %v699_v19 = vrot.slane %v2140_v17, 2  ;;  %v640_v20 = vpop.f32.mrb[5].mxu1 }
 0x2c0   : > { %v733_v21 = vrot.slane %v640_v20, 1  ;;  %v784_v22 = vrot.slane %v640_v20, 3  ;;  %v810_v23 = vrot.slane %v640_v20, 4  ;;  %v2144_v24 = vpop.f32.mrb[6].mxu1  ;;  %v758_v25 = vrot.slane %v640_v20, 2 }
 0x2c1   : > { %v671_v26 = vrot.slane %v2144_v24, 1  ;;  %v701_v27 = vrot.slane %v2144_v24, 2  ;;  %764 = vrot.lane.b32.xlu0 %v757_v14, %s1748_s11  ;;  %v644_v28 = vpop.f32.mrb[7].mxu1  ;;  %v670_v29 = vsel %vm665_vm2, %v667_v3, %v669_v18  ;;  %v700_v30 = vsel %vm695_vm3, %v697_v4, %v699_v19 }
 0x2c2   : > { %v735_v31 = vrot.slane %v644_v28, 1  ;;  %v760_v32 = vrot.slane %v644_v28, 2  ;;  %v786_v33 = vrot.slane %v644_v28, 3  ;;  %v812_v34 = vrot.slane %v644_v28, 4 }
 0x2c3   : > { %v759_v35 = vsel %vm695_vm3, %v756_v7, %v758_v25  ;;  %v785_v36 = vsel %vm780_vm4, %v782_v8, %v784_v22  ;;  %v734_v37 = vsel %vm665_vm2, %v731_v10, %v733_v21  ;;  %v672_v38 = vsel %vm665_vm2, %v669_v18, %v671_v26 }
 0x2c4   : > { %766 = vrot.lane.b32.xlu1 %v759_v35, %s1748_s11  ;;  %v736_v39 = vsel %vm665_vm2, %v733_v21, %v735_v31  ;;  %v761_v40 = vsel %vm695_vm3, %v758_v25, %v760_v32  ;;  %v787_v41 = vsel %vm780_vm4, %v784_v22, %v786_v33  ;;  %v702_v42 = vsel %vm695_vm3, %v699_v19, %v701_v27  ;;  %v1421_v35 = vld [vmem:[#allocation11 + $0x10] sm:$0xff]  }
 0x2c5   : > { %790 = vrot.lane.b32.xlu0 %v783_v15, %s1749_s1  ;;  %v811_v43 = vsel %vm806_vm5, %v808_v9, %v810_v23  ;;  %v2162_v44 = vsel %vm806_vm5, %v810_v23, %v812_v34  ;;  %v1420_v23 = vld [vmem:[#allocation11 + $0x8] sm:$0xff]  }
 0x2c6   : > { %v2164_v45 = vpop.f32.mrb[8].mxu1  ;;  %1243 = vmatprep.subr.bf16.mxu0 %v1420_v23 }
 0x2c7   : > { %v673_v46 = vrot.slane %v2164_v45, 1  ;;  %v703_v47 = vrot.slane %v2164_v45, 2  ;;  %v650_v48 = vpop.f32.mrb[9].mxu1  ;;  %1244 = vmatpush3.bf16.msra.mxu0 %v1420_v23 }
 0x2c8   : > { %792 = vrot.lane.b32.xlu1 %v785_v36, %s1749_s1  ;;  %v737_v49 = vrot.slane %v650_v48, 1  ;;  %v762_v50 = vrot.slane %v650_v48, 2  ;;  %v788_v51 = vrot.slane %v650_v48, 3  ;;  %v814_v52 = vrot.slane %v650_v48, 4  ;;  %v652_v53 = vpop.f32.mrb[10].mxu1  ;;  %1245 = vmatprep.subr.bf16.mxu0 %v1421_v35 }
 0x2c9   : > { %741 = vrot.lane.b32.xlu0 %v734_v37, %s1747_s10  ;;  %v653_v54 = vpop.f32.mrb[11].mxu1  ;;  %v674_v55 = vsel %vm665_vm2, %v671_v26, %v673_v46  ;;  %v704_v56 = vsel %vm695_vm3, %v701_v27, %v703_v47 }
 0x2ca   : > { %v738_v57 = vsel %vm665_vm2, %v735_v31, %v737_v49  ;;  %v763_v58 = vsel %vm695_vm3, %v760_v32, %v762_v50  ;;  %v789_v60 = vsel %vm780_vm4, %v786_v33, %v788_v51  ;;  %v815_v61 = vsel %vm806_vm5, %v812_v34, %v814_v52 }
 0x2cb   : > { %1246 = vmatpush3.bf16.msra.mxu0 %v1421_v35 }
 0x2cc   : > { %743 = vrot.lane.b32.xlu1 %v736_v39, %s1747_s10 }
 0x2cd   : > { %768 = vrot.lane.b32.xlu0 %v761_v40, %s1748_s11 }
 0x2d0   : > { %745 = vrot.lane.b32.xlu1 %v738_v57, %s1747_s10 }
 0x2d1   : > { %794 = vrot.lane.b32.xlu0 %v787_v41, %s1749_s1 }
 0x2d4   : > { %770 = vrot.lane.b32.xlu1 %v763_v58, %s1748_s11 }
 0x2d5   : > { %675 = vrot.lane.b32.xlu0 %v2128_v11, %s1747_s10 }
 0x2d8   : > { %796 = vrot.lane.b32.xlu1 %v789_v60, %s1749_s1 }
 0x2d9   : > { %679 = vrot.lane.b32.xlu0 %v672_v38, %s1747_s10  ;;  %v1422_v38 = vld [vmem:[#allocation11 + $0x18] sm:$0xff]  }
 0x2da   : > { %1247 = vmatprep.subr.bf16.mxu0 %v1422_v38 }
 0x2db   : > { %1248 = vmatpush3.bf16.msra.mxu0 %v1422_v38 }
 0x2dc   : > { %677 = vrot.lane.b32.xlu1 %v670_v29, %s1747_s10 }
 0x2dd   : > { %705 = vrot.lane.b32.xlu0 %v2131_v12, %s1748_s11 }
 0x2e0   : > { %681 = vrot.lane.b32.xlu1 %v674_v55, %s1747_s10  ;;  %v1200_v55 = vld [vmem:[#allocation10] ss:$0 sm:$0xff] }
 0x2e1   : > { %683 = vrot.lane.b32.xlu0 %v673_v46, %s1747_s10  ;;  %s1627_s10 = scalar_lea.vmem %s1626_s4, 1024 }
 0x2e2   : > { %p1629_p0 = scmp.lt.s32.totalorder %s1627_s10, %s1621_s3 }
 0x2e4   : > { %707 = vrot.lane.b32.xlu1 %v700_v30, %s1748_s11  ;;  %p1630_p2 = por %p1629_p0, %p1628_p13 }
 0x2e5   : > { %711 = vrot.lane.b32.xlu0 %v704_v56, %s1748_s11 }
 0x2e6   : > { %p1631_p1 = pnand %p1630_p2, %p1624_p5 }
 0x2e8   : > { %709 = vrot.lane.b32.xlu1 %v702_v42, %s1748_s11 }
 0x2ec   : > { %713 = vrot.lane.b32.xlu1 %v703_v47, %s1748_s11 }
 0x32f   : > { %v740_v62 = vpop.permute.xlu0 %739 }
 0x330   : > { %v751_v0 = vadd.f32 %v740_v62, %v2119_v59 }
 0x333   : > { %v765_v63 = vpop.permute.xlu0 %764 }
 0x334   : > { %v776_v3 = vadd.f32 %v765_v63, %v751_v0 }
 0x336   : > { %v767_v4 = vpop.permute.xlu1 %766 }
 0x337   : > { %v791_v5 = vpop.permute.xlu0 %790 }
 0x338   : > { %v802_v6 = vadd.f32 %v791_v5, %v776_v3 }
 0x33a   : > { %v820_v7 = vadd.f32 %v2137_v16, %v802_v6  ;;  %v793_v8 = vpop.permute.xlu1 %792 }
 0x33b   : > { %v742_v9 = vpop.permute.xlu0 %741 }
 0x33c   : > { %v829_v10 = vrot.slane %v820_v7, 7  ;;  %v752_v11 = vadd.f32 %v742_v9, %v2123_v1 }
 0x33e   : > { %v777_v12 = vadd.f32 %v767_v4, %v752_v11  ;;  %v744_v13 = vpop.permute.xlu1 %743  ;;  %836 = vrot.lane.b32.xlu1 %v829_v10, %s1748_s11 }
 0x33f   : > { %v753_v14 = vadd.f32 %v744_v13, %v2140_v17  ;;  %v769_v15 = vpop.permute.xlu0 %768 }
 0x340   : > { %v803_v18 = vadd.f32 %v793_v8, %v777_v12 }
 0x341   : > { %v778_v20 = vadd.f32 %v769_v15, %v753_v14 }
 0x342   : > { %v821_v19 = vadd.f32 %v811_v43, %v803_v18  ;;  %v746_v21 = vpop.permute.xlu1 %745 }
 0x343   : > { %v795_v22 = vpop.permute.xlu0 %794  ;;  %v754_v29 = vadd.f32 %v746_v21, %v2144_v24 }
 0x344   : > { %v804_v16 = vadd.f32 %v795_v22, %v778_v20  ;;  %v830_v25 = vrot.slane %v821_v19, 7 }
 0x346   : > { %v822_v26 = vadd.f32 %v2162_v44, %v804_v16  ;;  %v771_v27 = vpop.permute.xlu1 %770  ;;  %v831_v28 = vsel %vm828_vm6, %v829_v10, %v830_v25 }
 0x347   : > { %838 = vrot.lane.b32.xlu0 %v831_v28, %s1748_s11  ;;  %v779_v31 = vadd.f32 %v771_v27, %v754_v29  ;;  %v676_v41 = vpop.permute.xlu0 %675 }
 0x348   : > { %v832_v30 = vrot.slane %v822_v26, 7  ;;  %v690_v50 = vadd.f32 %v676_v41, %v2119_v59 }
 0x34a   : > { %v797_v32 = vpop.permute.xlu1 %796  ;;  %v833_v33 = vsel %vm828_vm6, %v830_v25, %v832_v30 }
 0x34b   : > { %v805_v34 = vadd.f32 %v797_v32, %v779_v31  ;;  %840 = vrot.lane.b32.xlu0 %v833_v33, %s1748_s11  ;;  %v680_v43 = vpop.permute.xlu0 %679  ;;  %v1201_v32 = vld [vmem:[#allocation13] ss:$0 sm:$0xff] }
 0x34c   : > { %v692_v63 = vadd.f32 %v680_v43, %v2140_v17 }
 0x34d   : > { %v823_v36 = vadd.f32 %v815_v61, %v805_v34 }
 0x34e   : > { %v678_v40 = vpop.permute.xlu1 %677 }
 0x34f   : > { %v834_v37 = vrot.slane %v823_v36, 7  ;;  %v706_v46 = vpop.permute.xlu0 %705  ;;  %v691_v54 = vadd.f32 %v678_v40, %v2123_v1 }
 0x350   : > { %v720_v52 = vadd.f32 %v706_v46, %v690_v50 }
 0x351   : > { %844 = vrot.lane.b32.xlu0 %v834_v37, %s1748_s11  ;;  %v835_v39 = vsel %vm828_vm6, %v832_v30, %v834_v37 }
 0x352   : > { %842 = vrot.lane.b32.xlu1 %v835_v39, %s1748_s11  ;;  %v682_v42 = vpop.permute.xlu1 %681 }
 0x353   : > { %v684_v48 = vpop.permute.xlu0 %683  ;;  %v693_v1 = vadd.f32 %v682_v42, %v2144_v24 }
 0x354   : > { %v694_v5 = vadd.f32 %v684_v48, %v2164_v45 }
 0x356   : > { %v708_v44 = vpop.permute.xlu1 %707 }
 0x357   : > { %v712_v53 = vpop.permute.xlu0 %711  ;;  %v721_v57 = vadd.f32 %v708_v44, %v691_v54 }
 0x358   : > { %v723_v8 = vadd.f32 %v712_v53, %v693_v1 }
 0x35a   : > { %v710_v47 = vpop.permute.xlu1 %709 }
 0x35b   : > { %v722_v59 = vadd.f32 %v710_v47, %v692_v63 }
 0x35e   : > { %v714_v49 = vpop.permute.xlu1 %713 }
 0x35f   : > { %v724_v7 = vadd.f32 %v714_v49, %v694_v5 }
 0x3b0   : > { %v837_v51 = vpop.permute.xlu1 %836 }
 0x3b1   : > { %v851_v56 = vsel %vm439_vm1, %v720_v52, %v837_v51 }
 0x3b2   : > { %v863_v58 = vadd.f32 %v1200_v55, %v851_v56 }
 0x3b4   : > { %v868_v0 = vmax.f32 %v863_v58, 0.0 }
 0x3b9   : > { %v839_v60 = vpop.permute.xlu0 %838 }
 0x3ba   : > { %v852_v61 = vsel %vm439_vm1, %v721_v57, %v839_v60 }
 0x3bb   : > { %v864_v62 = vadd.f32 %v1200_v55, %v852_v61 }
 0x3bd   : > { %v869_v2 = vmax.f32 %v864_v62, 0.0  ;;  %v841_v3 = vpop.permute.xlu0 %840 }
 0x3be   : > { %v853_v6 = vsel %vm439_vm1, %v722_v59, %v841_v3 }
 0x3bf   : > { %v873_v4 = vpack.c.bf16 %v869_v2, %v868_v0  ;;  %v865_v10 = vadd.f32 %v1200_v55, %v853_v6 }
 0x3c1   : > { %v895_v14 = vshll.u32 %v873_v4, 16  ;;  %v870_v19 = vmax.f32 %v865_v10, 0.0  ;;  %v893_v22 = vshrl.u32 %v873_v4, 16 }
 0x3c3   : > { %v845_v9 = vpop.permute.xlu0 %844  ;;  %v897_v21 = vrot.slane %v895_v14, 1 }
 0x3c4   : > { %v855_v11 = vsel %vm439_vm1, %v724_v7, %v845_v9  ;;  %v843_v12 = vpop.permute.xlu1 %842 }
 0x3c5   : > { %v867_v13 = vadd.f32 %v1200_v55, %v855_v11  ;;  %v854_v17 = vsel %vm439_vm1, %v723_v8, %v843_v12  ;;  %v898_v27 = vor.u32 %v897_v21, %v893_v22 }
 0x3c6   : > { %v866_v15 = vadd.f32 %v1200_v55, %v854_v17 }
 0x3c7   : > { %v872_v18 = vmax.f32 %v867_v13, 0.0 }
 0x3c8   : > { %v871_v20 = vmax.f32 %v866_v15, 0.0 }
 0x3c9   : > { %v875_v45 = vpack.c.bf16 %v872_v18, %v872_v18 }
 0x3ca   : > { %v874_v24 = vpack.c.bf16 %v871_v20, %v870_v19 }
 0x3cb   : > { %v908_v23 = vshll.u32 %v875_v45, 16 }
 0x3cc   : > { %v900_v16 = vshll.u32 %v874_v24, 16  ;;  %v904_v26 = vshrl.u32 %v874_v24, 16 }
 0x3cd   : > { %v910_v28 = vrot.slane %v908_v23, 1 }
 0x3ce   : > { %v902_v25 = vrot.slane %v900_v16, 1 }
 0x3d0   : > { %v906_v29 = vor.u32 %v904_v26, %v902_v25  ;;  %v903_v30 = vsel %vm891_vm7, %v898_v27, %v902_v25 }
 0x3d1   : > { %1249 = vmatprep.mubr.msk.bf16.mxu0 %vm936_vm8, %v903_v30 }
 0x3d2   : > { %v911_v31 = vsel %vm891_vm7, %v906_v29, %v910_v28 }
 0x3d3   : > { %1250 = vmatmul.mubr.msk.bf16.vlgmr.msra.gmra.mrb[12].mxu0 %vm936_vm8, %v911_v31 }
 0x4a6   : > { %v1251_v33 = vpop.f32.mrb[12].mxu0 }
 0x4a7   : > { %v986_v34 = vadd.f32 %v1251_v33, %v1201_v32  ;;  %v977_v35 = vpop.f32.mrb[13].mxu0 }
 0x4a8   : > { %v978_v36 = vadd.f32 %v1201_v32, %v977_v35  ;;  %v1252_v37 = vpop.f32.mrb[14].mxu0 }
 0x4a9   : > { %994 = vst [vmem:[%s395_s6 + $0x10] sm:$0xff] %v986_v34  ;;  %v989_v38 = vadd.f32 %v1252_v37, %v1201_v32  ;;  %v980_v39 = vpop.f32.mrb[15].mxu0 }
 0x4aa   : > { %992 = vst [vmem:[%s395_s6] sm:$0xff] %v978_v36  ;;  %v981_v40 = vadd.f32 %v1201_v32, %v980_v39 }
 0x4ab   : > { %995 = vst [vmem:[%s395_s6 + $0x18] sm:$0xff] %v989_v38 }
 0x4ac   : > { %993 = vst [vmem:[%s395_s6 + $0x8] sm:$0xff] %v981_v40 }
 0x4ad   : > { %1634 = shalt.err (!%p1631_p1)
}
 0x4ae   : > { %s1635_s11 = scalar_lea.hbm %s2223_s20, 512  ;;  %s1639_s7 = scalar_lea.hbm %s2327_s21, 2048 }
 0x4af   : > { %p1636_p6 = scmp.ne.s32.totalorder %s2223_s20, %s1635_s11  ;;  %p1640_p10 = scmp.lt.u32.totalorder %s2223_s20, %s2327_s21 }
 0x4b0   : > { %p1641_p3 = scmp.lt.u32.totalorder %s1639_s7, %s1635_s11  ;;  %p1643_p11 = scmp.lt.u32.totalorder %s1635_s11, %s2223_s20 }
 0x4b1   : > { %p1637_p8 = pnand %p1636_p6, %p2328_p4 }
 0x4b2   : > { %p1642_p12 = por %p1641_p3, %p1640_p10 }
 0x4b3   : > { %p1638_p9 = pneg %p1637_p8 }
 0x4b4   : > { %p1644_p7 = por %p1643_p11, %p1642_p12 }
 0x4b6   : > { %p1645_p5 = pnand %p1644_p7, %p1638_p9 }
 0x4b8   : > { %1648 = shalt.err (!%p1645_p5)
}
 0x4b9   : > { %s1751_s15 = smov 128   ;;  %s1752_s6 = smov 8  }
 0x4ba   : > { %1283 = dma.vmem_to_hbm [thread:$0]  (%p2328_p4), %s2218_s13, 512, %s2223_s20, %s997_s2, %s1751_s15, %s1751_s15, %s1752_s6  }
 0x4bb PF: > { %p1325_p13 = scmp.ge.s32.totalorder %s1731_s8, 2  ;;  %s1027_s23 = sand.u32 1, %s1703_s24  }
 0x4bc   : > { %p2329_p0 = scmp.ne.s32.totalorder %s2322_s19, 0  ;;  %s1028_s27 = scalar_lea.sflag [#allocation4], %s1027_s23 }
 0x4be   : > { %p1309_p2 = pnand %p1325_p13, %p2329_p0 }
 0x4c0   : > { %1698 = dma.done.wait (!%p1309_p2), %s1028_s27, 512  }
 0x4c1   : > { %1700 = vsyncadd (!%p1309_p2), %s1028_s27, 4294966784  ;;  %s26_s8 = sadd.s32 1, %s1731_s8   ;;  %s2330_s12 = sld [smem:[#allocation21_spill]] }
 0x4c2   : > { %p23_p1 = scmp.ge.s32.totalorder %s26_s8, 6   ;;  %s2331_s24 = smov %s1707_s25 }
 0x4c3   : > { %s2332_s25 = smov %s1711_s26  ;;  %s2333_s26 = smov %s2039_s9 }
 0x4c4   : > { %s2334_s27 = smov %s1723_s29  ;;  %s2335_s28 = smov %s1727_s30 }
 0x4c5   : > { %s2336_s29 = smov %s2339_s14  ;;  %25 = sbr.rel (!%p23_p1) target bundleno = 18 (0x12), region = 117 }
 0x4c7   : > { %s2337_s30 = smov %s2330_s12 }
 0x4cc   :  { %1033 = vsyncpa [#allocation3], 1 }
 0x4cd   :  { %1035 = vsyncpa [#allocation3 + $0x1], 1 }
 0x4ce   :  { %1036 = vsyncpa [#allocation6], 1 }
 0x4cf   :  { %1037 = vsyncpa [#allocation9], 1 }
 0x4d0   :  { %1038 = vsyncpa [#allocation12], 1 }
 0x4d1   :  { %1039 = vsyncpa [#allocation4], 1 }
 0x4d2   :  { %1041 = vsyncpa [#allocation4 + $0x1], 1 }

</bundles_post_ra>
